<compile_context>
chip_gen: v7x
topology: tpu7x:2x2x1
jax: 0.10.0
libtpu: 0.0.40
codegen_flags: <defaults>
</compile_context>

<pallas_src>
import functools

import jax
import jax.numpy as jnp
from jax.experimental import pallas as pl
from jax.experimental.pallas import tpu as pltpu


def _round_up(x, m):
    return ((x + m - 1) // m) * m


def _sublane_pack(dtype):
    # Minimum second-to-last block dim: 8 for 4-byte dtypes, 16 for bf16, 32 for int8/fp8.
    return max(8, 32 // jnp.dtype(dtype).itemsize)


def _vmem_capacity_bytes():
    try:
        return int(pltpu.get_tpu_info().vmem_capacity_bytes)
    except Exception:
        return 64 << 20  # conservative fallback = v7x per-TensorCore VMEM


def _looks_like_v7x():
    try:
        kind = jax.devices()[0].device_kind.lower()
    except Exception:
        return False
    return ("v7" in kind) or ("7x" in kind)


def _tile_vmem_bytes(bm, bi, bn, d_in, x_isz, w_isz, out_isz, use_scratch):
    b = 2 * bm * d_in * x_isz          # x tile (double-buffered)
    b += 2 * d_in * bi * w_isz         # gate-proj weight tile (double-buffered)
    b += 2 * d_in * bi * w_isz         # up-proj weight tile
    b += 2 * bi * bn * w_isz           # down-proj weight tile
    b += 2 * bm * bn * out_isz         # output tile
    if use_scratch:
        b += bm * bn * 4               # f32 accumulator scratch (bf16 outputs only)
    b += 3 * bm * bi * 4               # in-kernel f32 gate/up/proj intermediates
    return b


def _qwen2_mlp_kernel(x_ref, wg_ref, wu_ref, wd_ref, o_ref, *scratch,
                      clamp: bool, acc_in_out: bool):
    j = pl.program_id(2)
    acc_ref = o_ref if acc_in_out else scratch[0]

    @pl.when(j == 0)
    def _init():
        acc_ref[...] = jnp.zeros_like(acc_ref)

    # gate matmul on MXU (f32 accumulate); SiLU goes to VPU/EUP and overlaps
    # with the independent up matmul below.
    gate = jnp.dot(x_ref[...], wg_ref[...], preferred_element_type=jnp.float32)
    if clamp:
        gate = jnp.clip(gate, -100.0, 100.0)
    gate = gate * jax.nn.sigmoid(gate)  # SiLU

    up = jnp.dot(x_ref[...], wu_ref[...], preferred_element_type=jnp.float32)

    proj = gate * up
    if clamp:
        proj = jnp.clip(proj, -1000.0, 1000.0)

    # Partial down projection for this I tile, accumulated in f32.
    acc_ref[...] += jnp.dot(proj.astype(wd_ref.dtype), wd_ref[...],
                            preferred_element_type=jnp.float32)

    if not acc_in_out:
        @pl.when(j == pl.num_programs(2) - 1)
        def _store():
            o_ref[...] = acc_ref[...].astype(o_ref.dtype)


def qwen2_mlp(hidden_state, wg, wu, wd, *, clamp=False,
              block_m=None, block_i=None, block_n=None):
    """hidden_state: (B, S, D_in); wg/wu: (D_in, I); wd: (I, D_out)."""
    B, S, D_in = hidden_state.shape
    I = wg.shape[1]
    D_out = wd.shape[1]
    M = B * S

    x_dt = hidden_state.dtype
    x_isz = jnp.dtype(x_dt).itemsize
    w_isz = jnp.dtype(wg.dtype).itemsize
    out_isz = x_isz
    acc_in_out = jnp.dtype(x_dt) == jnp.float32  # f32 outputs accumulate in-place
    pack = _sublane_pack(x_dt)

    capacity = _vmem_capacity_bytes()
    budget = max(capacity - (12 << 20), 16 << 20)  # headroom for Mosaic scratch

    # --- VMEM-aware tile selection ------------------------------------------
    m_cap = _round_up(M, pack)
    bm_cands = []
    for c in (1024, 512, 256, 128):
        c = _round_up(min(c, m_cap), pack)
        if c not in bm_cands:
            bm_cands.append(c)
    bi_cands = [c for c in (2048, 1024, 512, 256, 128) if I % c == 0] or [I]

    if block_m is None or block_i is None:
        best = None
        for bm in bm_cands:
            if block_m is not None and bm != block_m:
                continue
            for bi in bi_cands:
                if block_i is not None and bi != block_i:
                    continue
                if _tile_vmem_bytes(bm, bi, D_out, D_in, x_isz, w_isz, out_isz,
                                    not acc_in_out) > budget:
                    continue
                # Prefer bi >= 512 (full MXU width), then largest bm (least weight
                # re-streaming), then largest bi.
                key = (min(bi, 512), bm, bi)
                if best is None or key > best[0]:
                    best = (key, bm, bi)
        if best is None:
            sel_bm, sel_bi = bm_cands[-1], bi_cands[-1]
        else:
            _, sel_bm, sel_bi = best
        block_m = sel_bm if block_m is None else block_m
        block_i = sel_bi if block_i is None else block_i

    assert I % block_i == 0, (I, block_i)
    M_pad = _round_up(M, block_m)
    grid_m = M_pad // block_m
    n_i = I // block_i

    if block_n is None:
        # Decode-shaped calls on v7x: split D_out so both TensorCores get work.
        if grid_m == 1 and D_out % 256 == 0 and _looks_like_v7x():
            block_n = D_out // 2
        else:
            block_n = D_out
    assert D_out % block_n == 0, (D_out, block_n)
    grid_n = D_out // block_n

    # --- prepare operands ----------------------------------------------------
    x2d = hidden_state.reshape(M, D_in)
    if M_pad != M:
        x2d = jnp.pad(x2d, ((0, M_pad - M), (0, 0)))  # SiLU(0)*0 = 0 -> safe

    # --- VMEM budget & cost estimate -----------------------------------------
    tile_bytes = _tile_vmem_bytes(block_m, block_i, block_n, D_in, x_isz, w_isz,
                                  out_isz, not acc_in_out)
    vmem_limit = int(min(max(tile_bytes + (8 << 20), 32 << 20),
                         capacity - (4 << 20)))

    flops = 2 * M_pad * (2 * D_in * I * grid_n + I * D_out)
    transcendentals = M_pad * I * grid_n
    bytes_accessed = int(
        grid_m * grid_n * 2 * D_in * I * w_isz   # gate/up weights re-streamed per (M,N) tile
        + grid_m * I * D_out * w_isz             # down-proj weights re-streamed per M tile
        + M_pad * D_in * x_isz
        + M_pad * D_out * out_isz
    )

    kernel = functools.partial(_qwen2_mlp_kernel, clamp=clamp, acc_in_out=acc_in_out)
    scratch_shapes = [] if acc_in_out else [pltpu.VMEM((block_m, block_n), jnp.float32)]

    out2d = pl.pallas_call(
        kernel,
        out_shape=jax.ShapeDtypeStruct((M_pad, D_out), x_dt),
        grid_spec=pltpu.PrefetchScalarGridSpec(
            num_scalar_prefetch=0,
            grid=(grid_m, grid_n, n_i),
            in_specs=[
                pl.BlockSpec((block_m, D_in), lambda i, n, j: (i, 0)),     # x tile
                pl.BlockSpec((D_in, block_i), lambda i, n, j: (0, j)),     # Wg tile
                pl.BlockSpec((D_in, block_i), lambda i, n, j: (0, j)),     # Wu tile
                pl.BlockSpec((block_i, block_n), lambda i, n, j: (j, n)),  # Wd tile
            ],
            out_specs=pl.BlockSpec((block_m, block_n), lambda i, n, j: (i, n)),
            scratch_shapes=scratch_shapes,
        ),
        compiler_params=pltpu.CompilerParams(
            dimension_semantics=("parallel", "parallel", "arbitrary"),
            vmem_limit_bytes=vmem_limit,
        ),
        cost_estimate=pl.CostEstimate(
            flops=flops,
            transcendentals=transcendentals,
            bytes_accessed=bytes_accessed,
        ),
    )(x2d, wg, wu, wd)

    if M_pad != M:
        out2d = out2d[:M]
    return out2d.reshape(B, S, D_out)


def _reference_mlp(hidden_state, wg, wu, wd, clamp=False):
    x = hidden_state.astype(jnp.float32)
    gate = x @ wg.astype(jnp.float32)
    if clamp:
        gate = jnp.clip(gate, -100.0, 100.0)
    gate = gate * jax.nn.sigmoid(gate)
    up = x @ wu.astype(jnp.float32)
    proj = gate * up
    if clamp:
        proj = jnp.clip(proj, -1000.0, 1000.0)
    return (proj @ wd.astype(jnp.float32)).astype(hidden_state.dtype)


if __name__ == "__main__":
    # Small shapes consistent with the module:
    #   input_size = 128, intermediate_ratio=None -> intermediate_size = 256,
    #   output_size = 128, batch = 2, seq = 8.
    input_size = 128
    intermediate_size = input_size * 2
    output_size = 128
    batch, seq = 2, 8

    key = jax.random.PRNGKey(0)
    k_x, k_g, k_u, k_d = jax.random.split(key, 4)

    x = jax.random.normal(k_x, (batch, seq, input_size), dtype=jnp.float32)
    # Weights stored as (in_features, out_features) == PyTorch weight.T
    scale_g = 1.0 / jnp.sqrt(jnp.float32(input_size))
    scale_d = 1.0 / jnp.sqrt(jnp.float32(intermediate_size))
    wg = jax.random.uniform(k_g, (input_size, intermediate_size),
                            minval=-scale_g, maxval=scale_g, dtype=jnp.float32)
    wu = jax.random.uniform(k_u, (input_size, intermediate_size),
                            minval=-scale_g, maxval=scale_g, dtype=jnp.float32)
    wd = jax.random.uniform(k_d, (intermediate_size, output_size),
                            minval=-scale_d, maxval=scale_d, dtype=jnp.float32)

    # 1) f32, no clamp — strict check (accumulates directly into the output block).
    out = jax.block_until_ready(qwen2_mlp(x, wg, wu, wd, clamp=False))
    ref = _reference_mlp(x, wg, wu, wd, clamp=False)
    assert out.shape == (batch, seq, output_size), out.shape
    assert jnp.allclose(out, ref, atol=1e-4, rtol=1e-4), \
        float(jnp.max(jnp.abs(out - ref)))

    # 2) f32, clamp=True with ragged M (exercises zero-padding of the M axis).
    x_r = jax.random.normal(k_x, (3, 5, input_size), dtype=jnp.float32) * 5.0
    out_r = jax.block_until_ready(qwen2_mlp(x_r, wg, wu, wd, clamp=True))
    ref_r = _reference_mlp(x_r, wg, wu, wd, clamp=True)
    assert out_r.shape == (3, 5, output_size), out_r.shape
    assert jnp.allclose(out_r, ref_r, atol=1e-3, rtol=1e-3), \
        float(jnp.max(jnp.abs(out_r - ref_r)))

    # 3) bf16 operands (native MXU bf16 feed, f32 scratch accumulator) — loose check.
    #    Note: proj is intentionally cast to bf16 before the down projection.
    xb = x.astype(jnp.bfloat16)
    wgb, wub, wdb = (w.astype(jnp.bfloat16) for w in (wg, wu, wd))
    out_b = jax.block_until_ready(qwen2_mlp(xb, wgb, wub, wdb, clamp=False))
    assert out_b.dtype == jnp.bfloat16
    assert jnp.allclose(out_b.astype(jnp.float32), ref, atol=1e-1, rtol=1e-1), \
        float(jnp.max(jnp.abs(out_b.astype(jnp.float32) - ref)))

    print("KERNEL_OK")
</pallas_src>

<mosaic_0001>
module attributes {stable_mosaic.version = 11 : i64} {
  func.func @_qwen2_mlp_kernel(%arg0: i32, %arg1: i32, %arg2: i32, %arg3: memref<16x128xf32, #tpu.memory_space<vmem>>, %arg4: memref<128x256xf32, #tpu.memory_space<vmem>>, %arg5: memref<128x256xf32, #tpu.memory_space<vmem>>, %arg6: memref<256x128xf32, #tpu.memory_space<vmem>>, %arg7: memref<16x128xf32, #tpu.memory_space<vmem>>) attributes {dimension_semantics = [#tpu.dimension_semantics<parallel>, #tpu.dimension_semantics<parallel>, #tpu.dimension_semantics<arbitrary>], iteration_bounds = array<i64: 1, 1, 1>, scalar_prefetch = 0 : i64, scratch_operands = 0 : i64, tpu.core_type = #tpu.core_type<tc>, window_params = [{transform_indices = @transform_0, window_bounds = array<i64: 16, 128>}, {transform_indices = @transform_1, window_bounds = array<i64: 128, 256>}, {transform_indices = @transform_2, window_bounds = array<i64: 128, 256>}, {transform_indices = @transform_3, window_bounds = array<i64: 256, 128>}, {transform_indices = @transform_4, window_bounds = array<i64: 16, 128>}]} {
    %c0_i32 = arith.constant 0 : i32
    %0 = arith.cmpi eq, %arg2, %c0_i32 : i32
    %1 = arith.extui %0 : i1 to i32
    %c0_i32_0 = arith.constant 0 : i32
    %2 = arith.cmpi ne, %1, %c0_i32_0 : i32
    scf.if %2 {
      %cst_17 = arith.constant 0.000000e+00 : f32
      %21 = vector.broadcast %cst_17 : f32 to vector<16x128xf32>
      %c0_18 = arith.constant 0 : index
      %c0_19 = arith.constant 0 : index
      %22 = vector.load %arg7[%c0_18, %c0_19] : memref<16x128xf32, #tpu.memory_space<vmem>>, vector<16x128xf32>
      tpu.vector_store %arg7[%c0_18, %c0_19], %21 {strides = array<i32>} : memref<16x128xf32, #tpu.memory_space<vmem>>, vector<16x128xf32>,
    } else {
    }
    %c0 = arith.constant 0 : index
    %c0_1 = arith.constant 0 : index
    %3 = vector.load %arg3[%c0, %c0_1] : memref<16x128xf32, #tpu.memory_space<vmem>>, vector<16x128xf32>
    %c0_2 = arith.constant 0 : index
    %c0_3 = arith.constant 0 : index
    %4 = vector.load %arg4[%c0_2, %c0_3] : memref<128x256xf32, #tpu.memory_space<vmem>>, vector<128x256xf32>
    %cst = arith.constant dense<0.000000e+00> : vector<16x256xf32>
    %5 = tpu.matmul %3, %4, %cst {dimension_numbers = #tpu.dot_dimension_numbers<[1], [0], [0], [1], [0, 0, 1, 1], [], []>} : vector<16x128xf32>, vector<128x256xf32>, vector<16x256xf32> -> vector<16x256xf32>
    %6 = arith.negf %5 : vector<16x256xf32>
    %7 = math.exp %6 : vector<16x256xf32>
    %cst_4 = arith.constant 1.000000e+00 : f32
    %8 = vector.broadcast %cst_4 : f32 to vector<16x256xf32>
    %9 = arith.addf %8, %7 : vector<16x256xf32>
    %10 = arith.divf %8, %9 : vector<16x256xf32>
    %11 = arith.mulf %5, %10 : vector<16x256xf32>
    %c0_5 = arith.constant 0 : index
    %c0_6 = arith.constant 0 : index
    %12 = vector.load %arg3[%c0_5, %c0_6] : memref<16x128xf32, #tpu.memory_space<vmem>>, vector<16x128xf32>
    %c0_7 = arith.constant 0 : index
    %c0_8 = arith.constant 0 : index
    %13 = vector.load %arg5[%c0_7, %c0_8] : memref<128x256xf32, #tpu.memory_space<vmem>>, vector<128x256xf32>
    %cst_9 = arith.constant dense<0.000000e+00> : vector<16x256xf32>
    %14 = tpu.matmul %12, %13, %cst_9 {dimension_numbers = #tpu.dot_dimension_numbers<[1], [0], [0], [1], [0, 0, 1, 1], [], []>} : vector<16x128xf32>, vector<128x256xf32>, vector<16x256xf32> -> vector<16x256xf32>
    %15 = arith.mulf %11, %14 : vector<16x256xf32>
    %c0_10 = arith.constant 0 : index
    %c0_11 = arith.constant 0 : index
    %16 = vector.load %arg7[%c0_10, %c0_11] : memref<16x128xf32, #tpu.memory_space<vmem>>, vector<16x128xf32>
    %c0_12 = arith.constant 0 : index
    %c0_13 = arith.constant 0 : index
    %17 = vector.load %arg6[%c0_12, %c0_13] : memref<256x128xf32, #tpu.memory_space<vmem>>, vector<256x128xf32>
    %cst_14 = arith.constant dense<0.000000e+00> : vector<16x128xf32>
    %18 = tpu.matmul %15, %17, %cst_14 {dimension_numbers = #tpu.dot_dimension_numbers<[1], [0], [0], [1], [0, 0, 1, 1], [], []>} : vector<16x256xf32>, vector<256x128xf32>, vector<16x128xf32> -> vector<16x128xf32>
    %19 = arith.addf %16, %18 : vector<16x128xf32>
    %c0_15 = arith.constant 0 : index
    %c0_16 = arith.constant 0 : index
    %20 = vector.load %arg7[%c0_15, %c0_16] : memref<16x128xf32, #tpu.memory_space<vmem>>, vector<16x128xf32>
    tpu.vector_store %arg7[%c0_15, %c0_16], %19 {strides = array<i32>} : memref<16x128xf32, #tpu.memory_space<vmem>>, vector<16x128xf32>,
    return
  }
  func.func @transform_0(%arg0: i32, %arg1: i32, %arg2: i32) -> (i32, i32) {
    %c0_i32 = arith.constant 0 : i32
    %c0_i32_0 = arith.constant 0 : i32
    return %arg0, %c0_i32 : i32, i32
  }
  func.func @transform_1(%arg0: i32, %arg1: i32, %arg2: i32) -> (i32, i32) {
    %c0_i32 = arith.constant 0 : i32
    %c0_i32_0 = arith.constant 0 : i32
    return %c0_i32, %arg2 : i32, i32
  }
  func.func @transform_2(%arg0: i32, %arg1: i32, %arg2: i32) -> (i32, i32) {
    %c0_i32 = arith.constant 0 : i32
    %c0_i32_0 = arith.constant 0 : i32
    return %c0_i32, %arg2 : i32, i32
  }
  func.func @transform_3(%arg0: i32, %arg1: i32, %arg2: i32) -> (i32, i32) {
    %c0_i32 = arith.constant 0 : i32
    return %arg2, %arg1 : i32, i32
  }
  func.func @transform_4(%arg0: i32, %arg1: i32, %arg2: i32) -> (i32, i32) {
    %c0_i32 = arith.constant 0 : i32
    return %arg0, %arg1 : i32, i32
  }
}

</mosaic_0001>

<bundles_post_ra>
// kernel: tpu_custom_call.1
= control target key start
LH: loop header
LB: loop body
LE: loop exit
PB: predicated region body
PF: predicated region fallthrough
CT: control target
= control target key end

     0   :  { %9 = vsyncpa [#allocation3], 0  ;;  %s882_s0 = inlined_call_operand.hbm [shape: f32[16,128], index: 0, kind: input, shape index: {}]   ;;  %s883_s1 = inlined_call_operand.hbm [shape: f32[128,256], index: 1, kind: input, shape index: {}]   ;;  %s884_s2 = inlined_call_operand.hbm [shape: f32[128,256], index: 2, kind: input, shape index: {}]   ;;  %s885_s3 = inlined_call_operand.hbm [shape: f32[256,128], index: 3, kind: input, shape index: {}]   ;;  %s886_s4 = inlined_call_operand.hbm [shape: f32[16,128], index: 4, kind: output, shape index: {}]  }
   0x1   :  { %10 = vsyncpa [#allocation6], 0 }
   0x2   :  { %11 = vsyncpa [#allocation9], 0 }
   0x3   :  { %12 = vsyncpa [#allocation4], 0  ;;  %s761_s15 = smov [#allocation5]   ;;  %s643_s19 = scalar_lea.hbm %s883_s1, 4096 }
   0x4   :  { %s30_s16 = sshll.u32 %s761_s15, 4  ;;  %p644_p0 = scmp.ne.s32.totalorder %s883_s1, %s643_s19  ;;  %s31_s16 = int_to_ptr.vmem [resolvable:$true] %s30_s16 }
   0x5   :  { %p647_p1 = scmp.lt.u32.totalorder %s643_s19, %s883_s1 }
   0x7   :  { %p649_p2 = pnand %p647_p1, %p644_p0 }
   0x9   :  { %652 = shalt.err (!%p649_p2)
}
   0xa   :  { %s653_s24 = scalar_lea.vmem %s31_s16, 4096  ;;  %p658_p4 = scmp.lt.s32.totalorder %s31_s16, %s31_s16 }
   0xb   :  { %p654_p3 = scmp.ne.s32.totalorder %s31_s16, %s653_s24  ;;  %p659_p5 = scmp.lt.s32.totalorder %s653_s24, %s653_s24 }
   0xd   :  { %p660_p6 = por %p659_p5, %p658_p4 }
   0xf   :  { %p661_p7 = pnand %p660_p6, %p654_p3 }
  0x11   :  { %664 = shalt.err (!%p661_p7)
}
  0x12   :  { %s762_s25 = smov 256   ;;  %s763_s26 = smov 16  }
  0x13   :  { %36 = dma.hbm_to_vmem [thread:$0]  %s883_s1, 4096, %s31_s16, [#allocation6], %s762_s25, %s762_s25, %s763_s26  }
  0x14   :  { %s764_s29 = smov [#allocation2]   ;;  %s665_s7 = scalar_lea.hbm %s882_s0, 256 }
  0x15   :  { %s18_s30 = sshll.u32 %s764_s29, 4  ;;  %p666_p8 = scmp.ne.s32.totalorder %s882_s0, %s665_s7  ;;  %s19_s30 = int_to_ptr.vmem [resolvable:$true] %s18_s30 }
  0x16   :  { %p669_p9 = scmp.lt.u32.totalorder %s665_s7, %s882_s0 }
  0x18   :  { %p671_p10 = pnand %p669_p9, %p666_p8 }
  0x1a   :  { %674 = shalt.err (!%p671_p10)
}
  0x1b   :  { %s675_s12 = scalar_lea.vmem %s19_s30, 256  ;;  %p680_p12 = scmp.lt.s32.totalorder %s19_s30, %s19_s30 }
  0x1c   :  { %p676_p11 = scmp.ne.s32.totalorder %s19_s30, %s675_s12  ;;  %p681_p13 = scmp.lt.s32.totalorder %s675_s12, %s675_s12 }
  0x1e   :  { %p682_p0 = por %p681_p13, %p680_p12 }
  0x20   :  { %p683_p1 = pnand %p682_p0, %p676_p11 }
  0x22   :  { %686 = shalt.err (!%p683_p1)
}
  0x23   :  { %s765_s1 = smov 128   ;;  %s766_s13 = smov 8  }
  0x24   :  { %24 = dma.hbm_to_vmem [thread:$0]  %s882_s0, 256, %s19_s30, [#allocation3], %s765_s1, %s765_s1, %s766_s13  }
  0x25   :  { %s767_s16 = smov [#allocation7]   ;;  %s768_s18 = smov [#allocation8]  }
  0x26   :  { %s42_s17 = sshll.u32 %s767_s16, 4  ;;  %s54_s19 = sshll.u32 %s768_s18, 4  ;;  %s43_s17 = int_to_ptr.vmem [resolvable:$true] %s42_s17  ;;  %s826_s19 = int_to_ptr.vmem [resolvable:$true] %s54_s19 }
  0x27   :  { %s687_s22 = scalar_lea.hbm %s884_s2, 4096 }
  0x28   :  { %p688_p2 = scmp.ne.s32.totalorder %s884_s2, %s687_s22  ;;  %p691_p3 = scmp.lt.u32.totalorder %s687_s22, %s884_s2 }
  0x2a   :  { %p693_p4 = pnand %p691_p3, %p688_p2 }
  0x2c   :  { %696 = shalt.err (!%p693_p4)
}
  0x2d   :  { %s697_s0 = scalar_lea.vmem %s43_s17, 4096  ;;  %p702_p6 = scmp.lt.s32.totalorder %s43_s17, %s43_s17 }
  0x2e   :  { %p698_p5 = scmp.ne.s32.totalorder %s43_s17, %s697_s0  ;;  %p703_p7 = scmp.lt.s32.totalorder %s697_s0, %s697_s0 }
  0x30   :  { %p704_p8 = por %p703_p7, %p702_p6 }
  0x32   :  { %p705_p9 = pnand %p704_p8, %p698_p5 }
  0x34   :  { %708 = shalt.err (!%p705_p9)
}
  0x35   :  { %48 = dma.hbm_to_vmem [thread:$0]  %s884_s2, 4096, %s43_s17, [#allocation6], %s762_s25, %s762_s25, %s763_s26  }
  0x36   :  { %s709_s7 = scalar_lea.hbm %s885_s3, 4096 }
  0x37   :  { %p710_p10 = scmp.ne.s32.totalorder %s885_s3, %s709_s7  ;;  %p713_p11 = scmp.lt.u32.totalorder %s709_s7, %s885_s3 }
  0x39   :  { %p715_p12 = pnand %p713_p11, %p710_p10 }
  0x3b   :  { %718 = shalt.err (!%p715_p12)
}
  0x3c   :  { %s719_s12 = scalar_lea.vmem %s826_s19, 4096  ;;  %p724_p0 = scmp.lt.s32.totalorder %s826_s19, %s826_s19 }
  0x3d   :  { %p720_p13 = scmp.ne.s32.totalorder %s826_s19, %s719_s12  ;;  %p725_p1 = scmp.lt.s32.totalorder %s719_s12, %s719_s12 }
  0x3f   :  { %p726_p2 = por %p725_p1, %p724_p0 }
  0x41   :  { %p727_p3 = pnand %p726_p2, %p720_p13 }
  0x43   :  { %730 = shalt.err (!%p727_p3)
}
  0x44   :  { %60 = dma.hbm_to_vmem [thread:$0]  %s885_s3, 4096, %s826_s19, [#allocation9], %s765_s1, %s765_s1, %s766_s13  }
  0x45   :  { %753 = dma.done.wait [#allocation3], 256  }
  0x46   :  { %754 = vsyncadd [#allocation3], 4294967040 }
  0x47   :  { %755 = dma.done.wait [#allocation6], 8192  }
  0x48   :  { %756 = vsyncadd [#allocation6], 4294959104 }
  0x49   :  { %757 = dma.done.wait [#allocation9], 4096  }
  0x4a   :  { %758 = vsyncadd [#allocation9], 4294963200  ;;  %v769_v0 = vmov 0.0   ;;  %v82_v1 = vld [vmem:[#allocation5 + $0x8] sm:$0xff]  ;;  %v84_v2 = vld [vmem:[#allocation5 + $0x18] sm:$0xff]  ;;  %s770_s3 = smov [#allocation10]  }
  0x4b   :  { %177 = vmatprep.mubr.f32.mxu0 %v769_v0  ;;  %314 = vmatprep.mubr.f32.mxu1 %v769_v0  ;;  %v81_v3 = vld [vmem:[#allocation5] sm:$0xff]  ;;  %v505_v4 = vpack.c.bf16 %v84_v2, %v82_v1  ;;  %v83_v5 = vld [vmem:[#allocation5 + $0x10] sm:$0xff]  ;;  %v86_v6 = vld [vmem:[#allocation5 + $0x28] sm:$0xff]  ;;  %s449_s26 = sshll.u32 %s770_s3, 4  ;;  %s450_s26 = int_to_ptr.vmem [resolvable:$true] %s449_s26 }
  0x4c   :  { %v88_v7 = vld [vmem:[#allocation5 + $0x38] sm:$0xff]  ;;  %v507_v8 = vpack.c.bf16 %v83_v5, %v81_v3  ;;  %v85_v10 = vld [vmem:[#allocation5 + $0x20] sm:$0xff]  ;;  %v87_v11 = vld [vmem:[#allocation5 + $0x30] sm:$0xff]  ;;  %s731_s14 = scalar_lea.vmem %s450_s26, 256  ;;  %p736_p5 = scmp.lt.s32.totalorder %s450_s26, %s450_s26 }
  0x4d   :  { %v509_v9 = vpack.c.bf16 %v88_v7, %v86_v6  ;;  %v90_v12 = vld [vmem:[#allocation5 + $0x48] sm:$0xff]  ;;  %506 = vmatprep.subr.bf16.mxu0 %v505_v4  ;;  %v92_v13 = vld [vmem:[#allocation5 + $0x58] sm:$0xff]  ;;  %v511_v14 = vpack.c.bf16 %v87_v11, %v85_v10  ;;  %v89_v16 = vld [vmem:[#allocation5 + $0x40] sm:$0xff]  ;;  %p732_p4 = scmp.ne.s32.totalorder %s450_s26, %s731_s14  ;;  %p737_p6 = scmp.lt.s32.totalorder %s731_s14, %s731_s14 }
  0x4e   :  { %508 = vmatpush1.bf16.msra.mxu0 %v507_v8  ;;  %v513_v15 = vpack.c.bf16 %v92_v13, %v90_v12  ;;  %v91_v17 = vld [vmem:[#allocation5 + $0x50] sm:$0xff]  ;;  %v94_v18 = vld [vmem:[#allocation5 + $0x68] sm:$0xff]  ;;  %v96_v19 = vld [vmem:[#allocation5 + $0x78] sm:$0xff] }
  0x4f   :  { %510 = vmatprep.subr.bf16.mxu0 %v509_v9  ;;  %v515_v20 = vpack.c.bf16 %v91_v17, %v89_v16  ;;  %v93_v21 = vld [vmem:[#allocation5 + $0x60] sm:$0xff]  ;;  %v517_v22 = vpack.c.bf16 %v96_v19, %v94_v18  ;;  %v95_v23 = vld [vmem:[#allocation5 + $0x70] sm:$0xff]  ;;  %v219_v24 = vld [vmem:[#allocation7 + $0x8] sm:$0xff]  ;;  %p738_p7 = por %p737_p6, %p736_p5 }
  0x50   :  { %v221_v25 = vld [vmem:[#allocation7 + $0x18] sm:$0xff]  ;;  %v98_v26 = vld [vmem:[#allocation5 + $0x88] sm:$0xff]  ;;  %v218_v29 = vld [vmem:[#allocation7] sm:$0xff]  ;;  %v519_v32 = vpack.c.bf16 %v95_v23, %v93_v21 }
  0x51   :  { %v100_v27 = vld [vmem:[#allocation5 + $0x98] sm:$0xff]  ;;  %v537_v28 = vpack.c.bf16 %v221_v25, %v219_v24  ;;  %v97_v30 = vld [vmem:[#allocation5 + $0x80] sm:$0xff]  ;;  %v220_v31 = vld [vmem:[#allocation7 + $0x10] sm:$0xff]  ;;  %p739_p8 = pnand %p738_p7, %p732_p4 }
  0x52   :  { %512 = vmatpush1.bf16.msra.mxu0 %v511_v14  ;;  %v99_v33 = vld [vmem:[#allocation5 + $0x90] sm:$0xff]  ;;  %v539_v34 = vpack.c.bf16 %v220_v31, %v218_v29  ;;  %v223_v35 = vld [vmem:[#allocation7 + $0x28] sm:$0xff]  ;;  %v225_v36 = vld [vmem:[#allocation7 + $0x38] sm:$0xff]  ;;  %v521_v37 = vpack.c.bf16 %v100_v27, %v98_v26 }
  0x53   :  { %514 = vmatprep.subr.bf16.mxu0 %v513_v15  ;;  %538 = vmatprep.subr.bf16.mxu1 %v537_v28  ;;  %v541_v38 = vpack.c.bf16 %v225_v36, %v223_v35  ;;  %v222_v39 = vld [vmem:[#allocation7 + $0x20] sm:$0xff]  ;;  %v224_v40 = vld [vmem:[#allocation7 + $0x30] sm:$0xff]  ;;  %v227_v41 = vld [vmem:[#allocation7 + $0x48] sm:$0xff]  ;;  %v523_v49 = vpack.c.bf16 %v99_v33, %v97_v30 }
  0x54   :  { %v102_v42 = vld [vmem:[#allocation5 + $0xa8] sm:$0xff]  ;;  %v104_v43 = vld [vmem:[#allocation5 + $0xb8] sm:$0xff]  ;;  %540 = vmatpush1.bf16.msra.mxu1 %v539_v34  ;;  %v543_v44 = vpack.c.bf16 %v224_v40, %v222_v39  ;;  %v226_v47 = vld [vmem:[#allocation7 + $0x40] sm:$0xff] }
  0x55   :  { %v229_v45 = vld [vmem:[#allocation7 + $0x58] sm:$0xff]  ;;  %542 = vmatprep.subr.bf16.mxu1 %v541_v38  ;;  %v228_v48 = vld [vmem:[#allocation7 + $0x50] sm:$0xff]  ;;  %v231_v50 = vld [vmem:[#allocation7 + $0x68] sm:$0xff]  ;;  %v525_v52 = vpack.c.bf16 %v104_v43, %v102_v42 }
  0x56   :  { %516 = vmatpush1.bf16.msra.mxu0 %v515_v20  ;;  %v545_v46 = vpack.c.bf16 %v229_v45, %v227_v41  ;;  %v233_v51 = vld [vmem:[#allocation7 + $0x78] sm:$0xff]  ;;  %v101_v53 = vld [vmem:[#allocation5 + $0xa0] sm:$0xff]  ;;  %v103_v54 = vld [vmem:[#allocation5 + $0xb0] sm:$0xff]  ;;  %v547_v57 = vpack.c.bf16 %v228_v48, %v226_v47 }
  0x57   :  { %518 = vmatprep.subr.bf16.mxu0 %v517_v22  ;;  %v106_v55 = vld [vmem:[#allocation5 + $0xc8] sm:$0xff]  ;;  %v108_v56 = vld [vmem:[#allocation5 + $0xd8] sm:$0xff]  ;;  %v549_v58 = vpack.c.bf16 %v233_v51, %v231_v50  ;;  %v230_v59 = vld [vmem:[#allocation7 + $0x60] sm:$0xff]  ;;  %v527_v61 = vpack.c.bf16 %v103_v54, %v101_v53 }
  0x58   :  { %544 = vmatpush1.bf16.msra.mxu1 %v543_v44  ;;  %v232_v60 = vld [vmem:[#allocation7 + $0x70] sm:$0xff]  ;;  %v235_v62 = vld [vmem:[#allocation7 + $0x88] sm:$0xff]  ;;  %v237_v63 = vld [vmem:[#allocation7 + $0x98] sm:$0xff]  ;;  %v529_v1 = vpack.c.bf16 %v108_v56, %v106_v55 }
  0x59   :  { %546 = vmatprep.subr.bf16.mxu1 %v545_v46  ;;  %v105_v2 = vld [vmem:[#allocation5 + $0xc0] sm:$0xff]  ;;  %v107_v3 = vld [vmem:[#allocation5 + $0xd0] sm:$0xff]  ;;  %v110_v4 = vld [vmem:[#allocation5 + $0xe8] sm:$0xff]  ;;  %v551_v6 = vpack.c.bf16 %v232_v60, %v230_v59  ;;  %v553_v7 = vpack.c.bf16 %v237_v63, %v235_v62 }
  0x5a   :  { %520 = vmatpush1.bf16.msra.mxu0 %v519_v32  ;;  %v112_v5 = vld [vmem:[#allocation5 + $0xf8] sm:$0xff]  ;;  %v234_v8 = vld [vmem:[#allocation7 + $0x80] sm:$0xff]  ;;  %v236_v9 = vld [vmem:[#allocation7 + $0x90] sm:$0xff]  ;;  %v531_v10 = vpack.c.bf16 %v107_v3, %v105_v2 }
  0x5b   :  { %522 = vmatprep.subr.bf16.mxu0 %v521_v37  ;;  %v239_v11 = vld [vmem:[#allocation7 + $0xa8] sm:$0xff]  ;;  %v241_v12 = vld [vmem:[#allocation7 + $0xb8] sm:$0xff]  ;;  %v533_v13 = vpack.c.bf16 %v112_v5, %v110_v4  ;;  %v109_v14 = vld [vmem:[#allocation5 + $0xe0] sm:$0xff]  ;;  %v555_v16 = vpack.c.bf16 %v236_v9, %v234_v8 }
  0x5c   :  { %548 = vmatpush1.bf16.msra.mxu1 %v547_v57  ;;  %v111_v15 = vld [vmem:[#allocation5 + $0xf0] sm:$0xff]  ;;  %v557_v17 = vpack.c.bf16 %v241_v12, %v239_v11  ;;  %v238_v18 = vld [vmem:[#allocation7 + $0xa0] sm:$0xff]  ;;  %v243_v21 = vld [vmem:[#allocation7 + $0xc8] sm:$0xff] }
  0x5d   :  { %550 = vmatprep.subr.bf16.mxu1 %v549_v58  ;;  %v240_v19 = vld [vmem:[#allocation7 + $0xb0] sm:$0xff]  ;;  %v535_v20 = vpack.c.bf16 %v111_v15, %v109_v14  ;;  %v245_v22 = vld [vmem:[#allocation7 + $0xd8] sm:$0xff]  ;;  %v242_v25 = vld [vmem:[#allocation7 + $0xc0] sm:$0xff] }
  0x5e   :  { %524 = vmatpush1.bf16.msra.mxu0 %v523_v49  ;;  %v559_v23 = vpack.c.bf16 %v240_v19, %v238_v18  ;;  %v561_v24 = vpack.c.bf16 %v245_v22, %v243_v21  ;;  %v244_v26 = vld [vmem:[#allocation7 + $0xd0] sm:$0xff]  ;;  %v247_v28 = vld [vmem:[#allocation7 + $0xe8] sm:$0xff]  ;;  %v249_v29 = vld [vmem:[#allocation7 + $0xf8] sm:$0xff] }
  0x5f   :  { %526 = vmatprep.subr.bf16.mxu0 %v525_v52  ;;  %v79_v27 = vld [vmem:[#allocation2] sm:$0xff]  ;;  %v563_v30 = vpack.c.bf16 %v244_v26, %v242_v25  ;;  %v565_v31 = vpack.c.bf16 %v249_v29, %v247_v28  ;;  %v246_v32 = vld [vmem:[#allocation7 + $0xe0] sm:$0xff]  ;;  %v80_v34 = vld [vmem:[#allocation2 + $0x8] sm:$0xff] }
  0x60   :  { %552 = vmatpush1.bf16.msra.mxu1 %v551_v6  ;;  %v248_v33 = vld [vmem:[#allocation7 + $0xf0] sm:$0xff]  ;;  %v349_v36 = vld [vmem:[#allocation8 + $0x80] sm:$0xff]  ;;  %v350_v37 = vld [vmem:[#allocation8 + $0x88] sm:$0xff] }
  0x61   :  { %554 = vmatprep.subr.bf16.mxu1 %v553_v7  ;;  %v567_v35 = vpack.c.bf16 %v248_v33, %v246_v32  ;;  %v569_v38 = vpack.c.bf16 %v350_v37, %v349_v36  ;;  %v333_v39 = vld [vmem:[#allocation8] sm:$0xff]  ;;  %v334_v40 = vld [vmem:[#allocation8 + $0x8] sm:$0xff]  ;;  %v351_v42 = vld [vmem:[#allocation8 + $0x90] sm:$0xff] }
  0x62   :  { %528 = vmatpush1.bf16.msra.mxu0 %v527_v61  ;;  %v571_v41 = vpack.c.bf16 %v334_v40, %v333_v39  ;;  %v352_v43 = vld [vmem:[#allocation8 + $0x98] sm:$0xff]  ;;  %v335_v45 = vld [vmem:[#allocation8 + $0x10] sm:$0xff]  ;;  %v354_v48 = vld [vmem:[#allocation8 + $0xa8] sm:$0xff] }
  0x63   :  { %530 = vmatprep.subr.bf16.mxu0 %v529_v1  ;;  %v573_v44 = vpack.c.bf16 %v352_v43, %v351_v42  ;;  %v336_v46 = vld [vmem:[#allocation8 + $0x18] sm:$0xff]  ;;  %v337_v50 = vld [vmem:[#allocation8 + $0x20] sm:$0xff]  ;;  %v338_v51 = vld [vmem:[#allocation8 + $0x28] sm:$0xff] }
  0x64   :  { %556 = vmatpush1.bf16.msra.mxu1 %v555_v16  ;;  %v575_v47 = vpack.c.bf16 %v336_v46, %v335_v45  ;;  %v579_v52 = vpack.c.bf16 %v338_v51, %v337_v50  ;;  %v355_v53 = vld [vmem:[#allocation8 + $0xb0] sm:$0xff]  ;;  %v356_v54 = vld [vmem:[#allocation8 + $0xb8] sm:$0xff]  ;;  %v357_v59 = vld [vmem:[#allocation8 + $0xc0] sm:$0xff] }
  0x65   :  { %558 = vmatprep.subr.bf16.mxu1 %v557_v17  ;;  %v581_v55 = vpack.c.bf16 %v356_v54, %v355_v53  ;;  %v339_v56 = vld [vmem:[#allocation8 + $0x30] sm:$0xff]  ;;  %v340_v57 = vld [vmem:[#allocation8 + $0x38] sm:$0xff]  ;;  %v358_v60 = vld [vmem:[#allocation8 + $0xc8] sm:$0xff] }
  0x66   :  { %532 = vmatpush1.bf16.msra.mxu0 %v531_v10  ;;  %v583_v58 = vpack.c.bf16 %v340_v57, %v339_v56  ;;  %v585_v61 = vpack.c.bf16 %v358_v60, %v357_v59  ;;  %v341_v62 = vld [vmem:[#allocation8 + $0x40] sm:$0xff]  ;;  %v342_v63 = vld [vmem:[#allocation8 + $0x48] sm:$0xff]  ;;  %v359_v2 = vld [vmem:[#allocation8 + $0xd0] sm:$0xff] }
  0x67   :  { %534 = vmatprep.subr.bf16.mxu0 %v533_v13  ;;  %v587_v1 = vpack.c.bf16 %v342_v63, %v341_v62  ;;  %v360_v3 = vld [vmem:[#allocation8 + $0xd8] sm:$0xff]  ;;  %v343_v5 = vld [vmem:[#allocation8 + $0x50] sm:$0xff]  ;;  %v361_v8 = vld [vmem:[#allocation8 + $0xe0] sm:$0xff] }
  0x68   :  { %560 = vmatpush1.bf16.msra.mxu1 %v559_v23  ;;  %v589_v4 = vpack.c.bf16 %v360_v3, %v359_v2  ;;  %v344_v6 = vld [vmem:[#allocation8 + $0x58] sm:$0xff]  ;;  %v362_v9 = vld [vmem:[#allocation8 + $0xe8] sm:$0xff]  ;;  %v345_v11 = vld [vmem:[#allocation8 + $0x60] sm:$0xff] }
  0x69   :  { %562 = vmatprep.subr.bf16.mxu1 %v561_v24  ;;  %v591_v7 = vpack.c.bf16 %v344_v6, %v343_v5  ;;  %v593_v10 = vpack.c.bf16 %v362_v9, %v361_v8  ;;  %v346_v12 = vld [vmem:[#allocation8 + $0x68] sm:$0xff]  ;;  %v363_v14 = vld [vmem:[#allocation8 + $0xf0] sm:$0xff]  ;;  %v364_v15 = vld [vmem:[#allocation8 + $0xf8] sm:$0xff] }
  0x6a   :  { %536 = vmatpush1.bf16.msra.mxu0 %v535_v20  ;;  %v595_v13 = vpack.c.bf16 %v346_v12, %v345_v11  ;;  %v597_v16 = vpack.c.bf16 %v364_v15, %v363_v14  ;;  %v347_v17 = vld [vmem:[#allocation8 + $0x70] sm:$0xff]  ;;  %v348_v18 = vld [vmem:[#allocation8 + $0x78] sm:$0xff] }
  0x6b   :  { %570 = vmatprep.subr.bf16.mxu0 %v569_v38  ;;  %v599_v19 = vpack.c.bf16 %v348_v18, %v347_v17 }
  0x6c   :  { %564 = vmatpush1.bf16.msra.mxu1 %v563_v30 }
  0x6d   :  { %178 = vmatmul.mubr.f32.vlgmr.msra.gmra.mrb[0].mxu0 %v79_v27  ;;  %566 = vmatprep.subr.bf16.mxu1 %v565_v31 }
  0x6e   :  { %183 = vmatprep.mubr.f32.mxu0 %v769_v0  ;;  %572 = vmatpush3.bf16.msra.mxu0 %v571_v41 }
  0x6f   :  { %574 = vmatprep.subr.bf16.mxu0 %v573_v44 }
  0x70   :  { %568 = vmatpush1.bf16.msra.mxu1 %v567_v35 }
  0x71   :  { %184 = vmatmul.mubr.f32.gmra.mrb[2].mxu0 %v80_v34  ;;  %601 = vmatprep.subr.bf16.mxu1 %v569_v38 }
  0x72   :  { %576 = vmatpush3.bf16.msra.mxu0 %v575_v47 }
  0x73   :  { %315 = vmatmul.mubr.f32.vlgmr.msra.gmra.mrb[0].mxu1 %v79_v27 }
  0x74   :  { %320 = vmatprep.mubr.f32.mxu1 %v769_v0  ;;  %609 = vmatpush3.bf16.msra.mxu1 %v571_v41  ;;  %v353_v0 = vld [vmem:[#allocation8 + $0xa0] sm:$0xff] }
  0x75   :  { %602 = vmatprep.subr.bf16.mxu1 %v573_v44  ;;  %v577_v49 = vpack.c.bf16 %v354_v48, %v353_v0 }
  0x77   :  { %321 = vmatmul.mubr.f32.gmra.mrb[2].mxu1 %v80_v34  ;;  %578 = vmatprep.subr.bf16.mxu0 %v577_v49 }
  0x78   :  { %610 = vmatpush3.bf16.msra.mxu1 %v575_v47  ;;  %580 = vmatpush3.bf16.msra.mxu0 %v579_v52 }
  0x79   :  { %603 = vmatprep.subr.bf16.mxu1 %v577_v49  ;;  %582 = vmatprep.subr.bf16.mxu0 %v581_v55 }
  0x7c   :  { %611 = vmatpush3.bf16.msra.mxu1 %v579_v52  ;;  %584 = vmatpush3.bf16.msra.mxu0 %v583_v58 }
  0x7d   :  { %604 = vmatprep.subr.bf16.mxu1 %v581_v55  ;;  %586 = vmatprep.subr.bf16.mxu0 %v585_v61 }
  0x80   :  { %612 = vmatpush3.bf16.msra.mxu1 %v583_v58  ;;  %588 = vmatpush3.bf16.msra.mxu0 %v587_v1 }
  0x81   :  { %605 = vmatprep.subr.bf16.mxu1 %v585_v61  ;;  %590 = vmatprep.subr.bf16.mxu0 %v589_v4 }
  0x84   :  { %613 = vmatpush3.bf16.msra.mxu1 %v587_v1  ;;  %592 = vmatpush3.bf16.msra.mxu0 %v591_v7 }
  0x85   :  { %606 = vmatprep.subr.bf16.mxu1 %v589_v4  ;;  %594 = vmatprep.subr.bf16.mxu0 %v593_v10 }
  0x88   :  { %614 = vmatpush3.bf16.msra.mxu1 %v591_v7  ;;  %596 = vmatpush3.bf16.msra.mxu0 %v595_v13 }
  0x89   :  { %607 = vmatprep.subr.bf16.mxu1 %v593_v10  ;;  %598 = vmatprep.subr.bf16.mxu0 %v597_v16 }
  0x8c   :  { %615 = vmatpush3.bf16.msra.mxu1 %v595_v13  ;;  %600 = vmatpush3.bf16.msra.mxu0 %v599_v19 }
  0x8d   :  { %608 = vmatprep.subr.bf16.mxu1 %v597_v16 }
  0x90   :  { %616 = vmatpush3.bf16.msra.mxu1 %v599_v19 }
 0x140   :  { %v179_v20 = vpop.f32.mrb[0].mxu0 }
 0x141   :  { %v463_v21 = vmul.f32 -1.442695, %v179_v20  ;;  %v181_v22 = vpop.f32.mrb[1].mxu0 }
 0x142   :  { %v464_v23 = vmul.f32 -1.442695, %v181_v22 }
 0x143   :  { %627 = vpow2.f32 %v463_v21 }
 0x144   :  { %629 = vpow2.f32 %v464_v23  ;;  %v185_v24 = vpop.f32.mrb[2].mxu0 }
 0x145   :  { %v465_v25 = vmul.f32 -1.442695, %v185_v24  ;;  %v187_v26 = vpop.f32.mrb[3].mxu0 }
 0x146   :  { %v466_v27 = vmul.f32 -1.442695, %v187_v26  ;;  %v316_v28 = vpop.f32.mrb[0].mxu1 }
 0x147   :  { %631 = vpow2.f32 %v465_v25  ;;  %v318_v29 = vpop.f32.mrb[1].mxu1 }
 0x148   :  { %633 = vpow2.f32 %v466_v27 }
 0x14a   :  { %v322_v33 = vpop.f32.mrb[2].mxu1 }
 0x14b   :  { %v324_v35 = vpop.f32.mrb[3].mxu1 }
 0x14d   :  { %v628_v30 = vpop.eup %627 }
 0x14e   :  { %v630_v31 = vpop.eup %629  ;;  %v202_v32 = vadd.f32 1.0, %v628_v30 }
 0x14f   :  { %v203_v34 = vadd.f32 1.0, %v630_v31 }
 0x150   :  { %635 = vrcp.f32 %v202_v32 }
 0x151   :  { %v632_v36 = vpop.eup %631  ;;  %637 = vrcp.f32 %v203_v34 }
 0x152   :  { %v634_v37 = vpop.eup %633  ;;  %v204_v38 = vadd.f32 1.0, %v632_v36 }
 0x153   :  { %v205_v39 = vadd.f32 1.0, %v634_v37 }
 0x154   :  { %639 = vrcp.f32 %v204_v38 }
 0x155   :  { %641 = vrcp.f32 %v205_v39 }
 0x15a   :  { %v636_v40 = vpop.eup %635 }
 0x15b   :  { %v638_v41 = vpop.eup %637  ;;  %v214_v42 = vmul.f32 %v636_v40, %v179_v20 }
 0x15c   :  { %v215_v43 = vmul.f32 %v638_v41, %v181_v22 }
 0x15d   :  { %v327_v44 = vmul.f32 %v316_v28, %v214_v42 }
 0x15e   :  { %v640_v45 = vpop.eup %639  ;;  %v328_v46 = vmul.f32 %v318_v29, %v215_v43 }
 0x15f   :  { %v642_v47 = vpop.eup %641  ;;  %v216_v0 = vmul.f32 %v640_v45, %v185_v24 }
 0x160   :  { %v217_v48 = vmul.f32 %v642_v47, %v187_v26  ;;  %429 = vmatprep.mubr.f32.mxu0 %v328_v46 }
 0x161   :  { %v329_v49 = vmul.f32 %v322_v33, %v216_v0  ;;  %430 = vmatmul.mubr.f32.vlgmr.msra.gmra.mrb[4].mxu0 %v327_v44 }
 0x162   :  { %v330_v50 = vmul.f32 %v324_v35, %v217_v48 }
 0x164   :  { %434 = vmatprep.mubr.f32.mxu1 %v330_v50 }
 0x165   :  { %435 = vmatmul.mubr.f32.vlgmr.msra.gmra.mrb[4].mxu1 %v329_v49 }
 0x234   :  { %v499_v51 = vpop.f32.mrb[4].mxu0 }
 0x235   :  { %v500_v52 = vpop.f32.mrb[5].mxu0 }
 0x236   :  { %v501_v53 = vadd.f32 %v500_v52, %v499_v51 }
 0x238   :  { %v502_v54 = vpop.f32.mrb[4].mxu1  ;;  %442 = vst [vmem:[#allocation10] sm:$0xff] %v501_v53 }
 0x239   :  { %v503_v55 = vpop.f32.mrb[5].mxu1 }
 0x23a   :  { %v504_v56 = vadd.f32 %v503_v55, %v502_v54 }
 0x23c   :  { %443 = vst [vmem:[#allocation10 + $0x8] sm:$0xff] %v504_v56 }
 0x23d   :  { %742 = shalt.err (!%p739_p8)
}
 0x23e   :  { %s743_s17 = scalar_lea.hbm %s886_s4, 256 }
 0x23f   :  { %p744_p9 = scmp.ne.s32.totalorder %s886_s4, %s743_s17  ;;  %p747_p10 = scmp.lt.u32.totalorder %s743_s17, %s886_s4 }
 0x241   :  { %p749_p11 = pnand %p747_p10, %p744_p9 }
 0x243   :  { %752 = shalt.err (!%p749_p11)
}
 0x244   :  { %455 = dma.vmem_to_hbm [thread:$0]  %s450_s26, 256, %s886_s4, [#allocation4], %s765_s1, %s765_s1, %s766_s13  }
 0x245   :  { %759 = dma.done.wait [#allocation4], 256  }
 0x246   :  { %760 = vsyncadd [#allocation4], 4294967040 }
 0x247   :  { %459 = vsyncpa [#allocation3], 1 }
 0x248   :  { %460 = vsyncpa [#allocation6], 1 }
 0x249   :  { %461 = vsyncpa [#allocation9], 1 }
 0x24a   :  { %462 = vsyncpa [#allocation4], 1 }

</bundles_post_ra>
